<compile_context>
chip_gen: v6e
topology: v6e:2x2x1
jax: 0.10.0
libtpu: 0.0.40
codegen_flags: <defaults>
</compile_context>

<pallas_src>
import jax
import jax.numpy as jnp
from jax.experimental import pallas as pl
from jax.experimental.pallas import tpu as pltpu

NUM_ANCHORS = 9          # RPN.anchor_list has 9 anchors
LEAKY_SLOPE = 0.01       # nn.LeakyReLU default
W_CONF = 1.0             # w_conf in RPN.forward
W_REG = 5.0              # w_reg in RPN.forward


def _round_up(x, m):
    return (x + m - 1) // m * m


# --------------------------------------------------------------------------------------
# Pallas kernel: fused RPN head on im2col rows
#   Conv2d 3x3 pad=1 -> [Dropout] -> LeakyReLU -> Conv2d 1x1, batch folded into rows.
# --------------------------------------------------------------------------------------
def rpn_head_kernel(x_ref, w1_ref, b1_ref, w2_ref, b2_ref, out_ref):
    # x_ref  : (TILE_M, K1p)   bf16   im2col rows (one row per output pixel, all images)
    # w1_ref : (K1p, Hp)       bf16   3x3 conv weight flattened to (9*Cin, hidden), padded
    # b1_ref : (1, Hp)         f32
    # w2_ref : (Hp, Cp)        bf16   1x1 conv weight, cout padded to lane-dense 128
    # b2_ref : (1, Cp)         f32
    # out_ref: (TILE_M, Cp)    f32
    h = jnp.dot(x_ref[...], w1_ref[...],
                preferred_element_type=jnp.float32) + b1_ref[...]
    # TODO(synk): nn.Dropout(0.3) is stochastic in train mode; applied as identity
    # (eval semantics) since RNG cannot match PyTorch anyway.
    h = jnp.where(h > 0, h, LEAKY_SLOPE * h)                        # LeakyReLU(0.01)
    out = jnp.dot(h.astype(jnp.bfloat16), w2_ref[...],
                  preferred_element_type=jnp.float32) + b2_ref[...]
    out_ref[...] = out


def _im2col_3x3(features):
    """(B, H, W, Cin) -> (B*H*W, 9*Cin); tap order (dy, dx, cin) matches w1.reshape."""
    B, H, W, Cin = features.shape
    xpad = jnp.pad(features, ((0, 0), (1, 1), (1, 1), (0, 0)))
    taps = [xpad[:, dy:dy + H, dx:dx + W, :] for dy in range(3) for dx in range(3)]
    return jnp.concatenate(taps, axis=-1).reshape(B * H * W, 9 * Cin)


def rpn_head(features, w1, b1, w2, b2, tile_m=None):
    """features: (B, H, W, Cin) f32 -> pred: (B, H, W, A*6) f32."""
    B, H, W, Cin = features.shape
    hidden = w1.shape[3]
    cout = w2.shape[1]

    x_col = _im2col_3x3(features)                                   # (M, 9*Cin) f32
    m_total, k1 = x_col.shape
    k1_pad = _round_up(k1, 128)
    hid_pad = _round_up(hidden, 128)
    cout_pad = _round_up(cout, 128)                                 # 54 -> 128 lane-dense
    if tile_m is None:
        # >=256 rows per MXU pass on v6e/v7x when the workload allows it, else 128.
        tile_m = 256 if m_total >= 256 else 128
    m_pad = _round_up(m_total, tile_m)

    # bf16 operands (f32 accumulation inside the kernel); biases stay f32.
    x_col = jnp.pad(x_col, ((0, m_pad - m_total), (0, k1_pad - k1))).astype(jnp.bfloat16)
    w1_col = jnp.pad(w1.reshape(k1, hidden),
                     ((0, k1_pad - k1), (0, hid_pad - hidden))).astype(jnp.bfloat16)
    b1_p = jnp.pad(b1.reshape(1, hidden),
                   ((0, 0), (0, hid_pad - hidden))).astype(jnp.float32)
    w2_p = jnp.pad(w2, ((0, hid_pad - hidden),
                        (0, cout_pad - cout))).astype(jnp.bfloat16)
    b2_p = jnp.pad(b2.reshape(1, cout),
                   ((0, 0), (0, cout_pad - cout))).astype(jnp.float32)

    out = pl.pallas_call(
        rpn_head_kernel,
        out_shape=jax.ShapeDtypeStruct((m_pad, cout_pad), jnp.float32),
        grid=(m_pad // tile_m,),
        in_specs=[
            pl.BlockSpec((tile_m, k1_pad), lambda i: (i, 0)),       # row tile (pipelined)
            pl.BlockSpec((k1_pad, hid_pad), lambda i: (0, 0)),      # weights: constant idx
            pl.BlockSpec((1, hid_pad), lambda i: (0, 0)),
            pl.BlockSpec((hid_pad, cout_pad), lambda i: (0, 0)),
            pl.BlockSpec((1, cout_pad), lambda i: (0, 0)),
        ],
        out_specs=pl.BlockSpec((tile_m, cout_pad), lambda i: (i, 0)),
        compiler_params=pltpu.CompilerParams(
            # Row-tile axis is independent -> shards across the 2 TCs on v7x.
            dimension_semantics=("parallel",),
            # Covers production shapes (Cin=1280, hidden=256, bf16) which exceed v5e's
            # 16 MiB default scoped VMEM; harmless at the small test shapes.
            vmem_limit_bytes=32 * 1024 * 1024,
        ),
    )(x_col, w1_col, b1_p, w2_p, b2_p)

    return out[:m_total, :cout].reshape(B, H, W, cout)


# --------------------------------------------------------------------------------------
# GenerateProposal('FasterRCNN') + ConfScoreRegression + BboxRegression.
# Kept in plain JAX per performance review: a few hundred FLOPs on (2M,2)/(M,4) tensors,
# a dedicated pallas_call was pure launch + HBM-roundtrip overhead.
# --------------------------------------------------------------------------------------
def proposal_and_loss(conf_scores, offsets, gt_offsets, pos_anchor_coord, batch_size):
    M = offsets.shape[0]

    # ConfScoreRegression: BCE-with-logits, targets [1,0] (first M) / [0,1] (last M), sum.
    x = conf_scores
    y = jnp.zeros_like(x).at[:M, 0].set(1.0).at[M:, 1].set(1.0)
    bce = jnp.maximum(x, 0.0) - x * y + jnp.log1p(jnp.exp(-jnp.abs(x)))
    conf_loss = jnp.sum(bce)

    # BboxRegression: SmoothL1 (beta=1), reduction='sum'.
    d = jnp.abs(offsets - gt_offsets)
    reg_loss = jnp.sum(jnp.where(d < 1.0, 0.5 * d * d, d - 0.5))

    total_loss = (W_CONF * conf_loss + W_REG * reg_loss) / batch_size

    # GenerateProposal(method='FasterRCNN')
    anc = pos_anchor_coord
    aw = anc[:, 2:3] - anc[:, 0:1]
    ah = anc[:, 3:4] - anc[:, 1:2]
    acx = (anc[:, 0:1] + anc[:, 2:3]) * 0.5
    acy = (anc[:, 1:2] + anc[:, 3:4]) * 0.5
    ncx = acx + offsets[:, 0:1] * aw
    ncy = acy + offsets[:, 1:2] * ah
    nw = aw * jnp.exp(offsets[:, 2:3])
    nh = ah * jnp.exp(offsets[:, 3:4])
    proposals = jnp.concatenate(
        [ncx - 0.5 * nw, ncy - 0.5 * nh, ncx + 0.5 * nw, ncy + 0.5 * nh], axis=1)
    return proposals, total_loss


# --------------------------------------------------------------------------------------
# RPN forward (training path, output_mode='loss' / 'all')
# --------------------------------------------------------------------------------------
def rpn_forward(images, bboxes, params, pos_anchor_coord, pos_anchor_idx,
                neg_anchor_idx, gt_offsets, output_mode="loss"):
    # TODO(synk): FeatureExtractor (torchvision MobileNetV2 backbone, 1280-dim) is not
    # provided in the reference code; replaced by a deterministic avg-pool + 1x1
    # projection stand-in (plain-JAX glue).
    # TODO(synk): GenerateGrid / GenerateAnchor / IoU / ReferenceOnActivatedAnchors are
    # not provided; pos/neg anchor indices, coords and GT offsets are synthesized
    # deterministically (so `bboxes` is unused here).
    B = images.shape[0]
    imgs = jnp.transpose(images, (0, 2, 3, 1))                      # NCHW -> NHWC
    Himg, Wimg = imgs.shape[1], imgs.shape[2]
    pooled = imgs.reshape(B, Himg // 2, 2, Wimg // 2, 2, 3).mean(axis=(2, 4))
    features = jnp.einsum("bhwc,cf->bhwf", pooled, params["w_proj"]) + params["b_proj"]

    # ProposalModule.pred_layer (Pallas kernel)
    pred = rpn_head(features, params["w1"], params["b1"], params["w2"], params["b2"])
    B_, H, W, _ = pred.shape
    A = NUM_ANCHORS
    # equivalent of pred.view(B, A, 6, H, W) + _extract_anchor_data's permute/flatten
    pred_flat = pred.reshape(B_, H, W, A, 6).transpose(0, 3, 1, 2, 4).reshape(-1, 6)
    conf_all = pred_flat[:, :2]
    off_all = pred_flat[:, 2:]

    pos_scores = jnp.take(conf_all, pos_anchor_idx, axis=0)
    neg_scores = jnp.take(conf_all, neg_anchor_idx, axis=0)
    conf_scores = jnp.concatenate([pos_scores, neg_scores], axis=0)  # (2M, 2)
    offsets = jnp.take(off_all, pos_anchor_idx, axis=0)              # (M, 4)

    proposals, total_loss = proposal_and_loss(conf_scores, offsets, gt_offsets,
                                              pos_anchor_coord, B)
    if output_mode == "loss":
        return total_loss
    anc_per_img = A * H * W
    return (total_loss, conf_scores, proposals, features,
            pos_anchor_idx, neg_anchor_idx, anc_per_img)


# --------------------------------------------------------------------------------------
# Pure-JAX reference (same math, f32 HIGHEST precision) for a sanity check
# --------------------------------------------------------------------------------------
def reference_loss(images, params, pos_anchor_coord, pos_anchor_idx,
                   neg_anchor_idx, gt_offsets):
    B = images.shape[0]
    imgs = jnp.transpose(images, (0, 2, 3, 1))
    Himg, Wimg = imgs.shape[1], imgs.shape[2]
    pooled = imgs.reshape(B, Himg // 2, 2, Wimg // 2, 2, 3).mean(axis=(2, 4))
    features = jnp.einsum("bhwc,cf->bhwf", pooled, params["w_proj"]) + params["b_proj"]
    xp = jnp.pad(features, ((0, 0), (1, 1), (1, 1), (0, 0)))
    H, W = features.shape[1], features.shape[2]
    hidden = params["w1"].shape[3]
    acc = jnp.zeros(features.shape[:3] + (hidden,), jnp.float32)
    for dy in range(3):
        for dx in range(3):
            acc = acc + jnp.einsum("bhwc,cf->bhwf", xp[:, dy:dy + H, dx:dx + W, :],
                                   params["w1"][dy, dx],
                                   precision=jax.lax.Precision.HIGHEST)
    acc = acc + params["b1"][0]
    h = jnp.where(acc > 0, acc, LEAKY_SLOPE * acc)
    pred = jnp.einsum("bhwf,fo->bhwo", h, params["w2"],
                      precision=jax.lax.Precision.HIGHEST) + params["b2"][0]
    A = NUM_ANCHORS
    pred_flat = pred.reshape(B, H, W, A, 6).transpose(0, 3, 1, 2, 4).reshape(-1, 6)
    conf_all, off_all = pred_flat[:, :2], pred_flat[:, 2:]
    conf = jnp.concatenate([jnp.take(conf_all, pos_anchor_idx, axis=0),
                            jnp.take(conf_all, neg_anchor_idx, axis=0)], axis=0)
    off = jnp.take(off_all, pos_anchor_idx, axis=0)
    M = off.shape[0]
    y = jnp.zeros_like(conf).at[:M, 0].set(1.0).at[M:, 1].set(1.0)
    bce = jnp.maximum(conf, 0.0) - conf * y + jnp.log1p(jnp.exp(-jnp.abs(conf)))
    conf_loss = bce.sum()
    d = jnp.abs(off - gt_offsets)
    reg_loss = jnp.where(d < 1.0, 0.5 * d * d, d - 0.5).sum()
    return (W_CONF * conf_loss + W_REG * reg_loss) / B


def init_params(key, cin, hidden, num_anchors):
    ks = jax.random.split(key, 3)
    cout = num_anchors * 6
    return dict(
        w_proj=jax.random.normal(ks[0], (3, cin), jnp.float32) / jnp.sqrt(3.0),
        b_proj=jnp.zeros((cin,), jnp.float32),
        w1=jax.random.normal(ks[1], (3, 3, cin, hidden), jnp.float32)
           / jnp.sqrt(9.0 * cin),
        b1=jnp.zeros((1, hidden), jnp.float32),
        w2=jax.random.normal(ks[2], (hidden, cout), jnp.float32)
           / jnp.sqrt(float(hidden)),
        b2=jnp.zeros((1, cout), jnp.float32),
    )


if __name__ == "__main__":
    key = jax.random.PRNGKey(0)
    (k_img, k_box, k_par, k_pos, k_neg,
     k_coord, k_wh, k_gt) = jax.random.split(key, 8)

    # Small shapes consistent with the module (real module: in_dim=1280, hidden=256,
    # images 224x224 -> 7x7 features; scaled down here).
    B, H_IMG, W_IMG = 2, 16, 16
    CIN, HIDDEN, A, M = 32, 128, NUM_ANCHORS, 16
    HF = WF = H_IMG // 2

    images = jax.random.normal(k_img, (B, 3, H_IMG, W_IMG), jnp.float32)
    bboxes = jax.random.uniform(k_box, (B, 4, 5), jnp.float32) * 16.0  # unused (TODO above)
    params = init_params(k_par, CIN, HIDDEN, A)

    n_anchors_total = B * A * HF * WF
    pos_anchor_idx = jax.random.randint(k_pos, (M,), 0, n_anchors_total)
    neg_anchor_idx = jax.random.randint(k_neg, (M,), 0, n_anchors_total)
    tl = jax.random.uniform(k_coord, (M, 2), minval=0.0, maxval=8.0)
    wh = jax.random.uniform(k_wh, (M, 2), minval=1.0, maxval=6.0)
    pos_anchor_coord = jnp.concatenate([tl, tl + wh], axis=1)
    gt_offsets = jax.random.normal(k_gt, (M, 4), jnp.float32) * 0.1

    outs = rpn_forward(images, bboxes, params, pos_anchor_coord, pos_anchor_idx,
                       neg_anchor_idx, gt_offsets, output_mode="all")
    total_loss, conf_scores, proposals = outs[0], outs[1], outs[2]
    jax.block_until_ready((total_loss, conf_scores, proposals))

    ref = reference_loss(images, params, pos_anchor_coord, pos_anchor_idx,
                         neg_anchor_idx, gt_offsets)
    assert conf_scores.shape == (2 * M, 2) and proposals.shape == (M, 4)
    assert jnp.allclose(total_loss, ref, rtol=2e-2, atol=2e-2), (total_loss, ref)
    print("KERNEL_OK")
</pallas_src>

<mosaic_0001>
module attributes {stable_mosaic.version = 11 : i64} {
  func.func @rpn_head_kernel(%arg0: i32, %arg1: memref<128x384xbf16, #tpu.memory_space<vmem>>, %arg2: memref<384x128xbf16, #tpu.memory_space<vmem>>, %arg3: memref<1x128xf32, #tpu.memory_space<vmem>>, %arg4: memref<128x128xbf16, #tpu.memory_space<vmem>>, %arg5: memref<1x128xf32, #tpu.memory_space<vmem>>, %arg6: memref<128x128xf32, #tpu.memory_space<vmem>>) attributes {dimension_semantics = [#tpu.dimension_semantics<parallel>], iteration_bounds = array<i64: 1>, scalar_prefetch = 0 : i64, scratch_operands = 0 : i64, tpu.core_type = #tpu.core_type<tc>, window_params = [{transform_indices = @transform_0, window_bounds = array<i64: 128, 384>}, {pipeline_mode = #tpu.pipeline_mode<synchronous>, transform_indices = @transform_1, window_bounds = array<i64: 384, 128>}, {pipeline_mode = #tpu.pipeline_mode<synchronous>, transform_indices = @transform_2, window_bounds = array<i64: 1, 128>}, {pipeline_mode = #tpu.pipeline_mode<synchronous>, transform_indices = @transform_3, window_bounds = array<i64: 128, 128>}, {pipeline_mode = #tpu.pipeline_mode<synchronous>, transform_indices = @transform_4, window_bounds = array<i64: 1, 128>}, {transform_indices = @transform_5, window_bounds = array<i64: 128, 128>}]} {
    %c0 = arith.constant 0 : index
    %c0_0 = arith.constant 0 : index
    %0 = vector.load %arg1[%c0, %c0_0] : memref<128x384xbf16, #tpu.memory_space<vmem>>, vector<128x384xbf16>
    %c0_1 = arith.constant 0 : index
    %c0_2 = arith.constant 0 : index
    %1 = vector.load %arg2[%c0_1, %c0_2] : memref<384x128xbf16, #tpu.memory_space<vmem>>, vector<384x128xbf16>
    %cst = arith.constant dense<0.000000e+00> : vector<128x128xf32>
    %2 = tpu.matmul %0, %1, %cst {dimension_numbers = #tpu.dot_dimension_numbers<[1], [0], [0], [1], [0, 0, 1, 1], [], []>} : vector<128x384xbf16>, vector<384x128xbf16>, vector<128x128xf32> -> vector<128x128xf32>
    %c0_3 = arith.constant 0 : index
    %c0_4 = arith.constant 0 : index
    %3 = vector.load %arg3[%c0_3, %c0_4] : memref<1x128xf32, #tpu.memory_space<vmem>>, vector<1x128xf32>
    %4 = vector.broadcast %3 : vector<1x128xf32> to vector<128x128xf32>
    %5 = arith.addf %2, %4 : vector<128x128xf32>
    %cst_5 = arith.constant 0.000000e+00 : f32
    %6 = vector.broadcast %cst_5 : f32 to vector<128x128xf32>
    %7 = arith.cmpf ogt, %5, %6 : vector<128x128xf32>
    %cst_6 = arith.constant 0.00999999977 : f32
    %8 = vector.broadcast %cst_6 : f32 to vector<128x128xf32>
    %9 = arith.mulf %8, %5 : vector<128x128xf32>
    %10 = arith.select %7, %5, %9 : vector<128x128xi1>, vector<128x128xf32>
    %11 = arith.truncf %10 : vector<128x128xf32> to vector<128x128xbf16>
    %c0_7 = arith.constant 0 : index
    %c0_8 = arith.constant 0 : index
    %12 = vector.load %arg4[%c0_7, %c0_8] : memref<128x128xbf16, #tpu.memory_space<vmem>>, vector<128x128xbf16>
    %cst_9 = arith.constant dense<0.000000e+00> : vector<128x128xf32>
    %13 = tpu.matmul %11, %12, %cst_9 {dimension_numbers = #tpu.dot_dimension_numbers<[1], [0], [0], [1], [0, 0, 1, 1], [], []>} : vector<128x128xbf16>, vector<128x128xbf16>, vector<128x128xf32> -> vector<128x128xf32>
    %c0_10 = arith.constant 0 : index
    %c0_11 = arith.constant 0 : index
    %14 = vector.load %arg5[%c0_10, %c0_11] : memref<1x128xf32, #tpu.memory_space<vmem>>, vector<1x128xf32>
    %15 = vector.broadcast %14 : vector<1x128xf32> to vector<128x128xf32>
    %16 = arith.addf %13, %15 : vector<128x128xf32>
    %c0_12 = arith.constant 0 : index
    %c0_13 = arith.constant 0 : index
    %17 = vector.load %arg6[%c0_12, %c0_13] : memref<128x128xf32, #tpu.memory_space<vmem>>, vector<128x128xf32>
    tpu.vector_store %arg6[%c0_12, %c0_13], %16 {strides = array<i32>} : memref<128x128xf32, #tpu.memory_space<vmem>>, vector<128x128xf32>,
    return
  }
  func.func @transform_0(%arg0: i32) -> (i32, i32) {
    %c0_i32 = arith.constant 0 : i32
    %c0_i32_0 = arith.constant 0 : i32
    return %arg0, %c0_i32 : i32, i32
  }
  func.func @transform_1(%arg0: i32) -> (i32, i32) {
    %c0_i32 = arith.constant 0 : i32
    %c0_i32_0 = arith.constant 0 : i32
    %c0_i32_1 = arith.constant 0 : i32
    return %c0_i32, %c0_i32_0 : i32, i32
  }
  func.func @transform_2(%arg0: i32) -> (i32, i32) {
    %c0_i32 = arith.constant 0 : i32
    %c0_i32_0 = arith.constant 0 : i32
    %c0_i32_1 = arith.constant 0 : i32
    return %c0_i32, %c0_i32_0 : i32, i32
  }
  func.func @transform_3(%arg0: i32) -> (i32, i32) {
    %c0_i32 = arith.constant 0 : i32
    %c0_i32_0 = arith.constant 0 : i32
    %c0_i32_1 = arith.constant 0 : i32
    return %c0_i32, %c0_i32_0 : i32, i32
  }
  func.func @transform_4(%arg0: i32) -> (i32, i32) {
    %c0_i32 = arith.constant 0 : i32
    %c0_i32_0 = arith.constant 0 : i32
    %c0_i32_1 = arith.constant 0 : i32
    return %c0_i32, %c0_i32_0 : i32, i32
  }
  func.func @transform_5(%arg0: i32) -> (i32, i32) {
    %c0_i32 = arith.constant 0 : i32
    %c0_i32_0 = arith.constant 0 : i32
    return %arg0, %c0_i32 : i32, i32
  }
}

</mosaic_0001>

<bundles_post_ra>
// kernel: tpu_custom_call.1
= control target key start
LH: loop header
LB: loop body
LE: loop exit
PB: predicated region body
PF: predicated region fallthrough
CT: control target
= control target key end

     0   :  { %10 = vsyncpa [#allocation3], 0  ;;  %s1328_s0 = inlined_call_operand.hbm [shape: bf16[128,384], index: 0, kind: input, shape index: {}]   ;;  %s1329_s1 = inlined_call_operand.hbm [shape: bf16[384,128], index: 1, kind: input, shape index: {}]   ;;  %s1330_s2 = inlined_call_operand.vmem [shape: f32[1,128], index: 2, kind: input, shape index: {}]   ;;  %s1331_s3 = inlined_call_operand.hbm [shape: bf16[128,128], index: 3, kind: input, shape index: {}]   ;;  %s1332_s4 = inlined_call_operand.vmem [shape: f32[1,128], index: 4, kind: input, shape index: {}]   ;;  %s1333_s5 = inlined_call_operand.hbm [shape: f32[128,128], index: 5, kind: output, shape index: {}]  }
   0x1   :  { %11 = vsyncpa [#allocation6], 0 }
   0x2   :  { %12 = vsyncpa [#allocation4], 0  ;;  %s1252_s18 = smov [#allocation5]  }
   0x3   :  { %s30_s19 = sshll.u32 %s1252_s18, 4  ;;  %s31_s19 = int_to_ptr.vmem [resolvable:$true] %s30_s19 }
   0x4   :  { %s1174_s20 = scalar_lea.vmem %s31_s19, 3072  ;;  %p1179_p1 = scmp.lt.s32.totalorder %s31_s19, %s31_s19 }
   0x5   :  { %p1175_p0 = scmp.ne.s32.totalorder %s31_s19, %s1174_s20  ;;  %p1180_p2 = scmp.lt.s32.totalorder %s1174_s20, %s1174_s20 }
   0x7   :  { %p1181_p3 = por %p1180_p2, %p1179_p1 }
   0x9   :  { %p1182_p4 = pnand %p1181_p3, %p1175_p0 }
   0xb   :  { %1185 = shalt.err (!%p1182_p4)
}
   0xc   :  { %s1253_s21 = smov 64   ;;  %s1254_s22 = smov 4  }
   0xd   :  { %36 = dma.hbm_to_vmem [thread:$0]  %s1329_s1, 3072, %s31_s19, [#allocation6], %s1253_s21, %s1253_s21, %s1254_s22  }
   0xe   :  { %s1255_s25 = smov [#allocation2]  }
   0xf   :  { %s18_s26 = sshll.u32 %s1255_s25, 4  ;;  %s19_s26 = int_to_ptr.vmem [resolvable:$true] %s18_s26 }
  0x10   :  { %s1194_s27 = scalar_lea.vmem %s19_s26, 3072  ;;  %p1199_p6 = scmp.lt.s32.totalorder %s19_s26, %s19_s26 }
  0x11   :  { %p1195_p5 = scmp.ne.s32.totalorder %s19_s26, %s1194_s27  ;;  %p1200_p7 = scmp.lt.s32.totalorder %s1194_s27, %s1194_s27 }
  0x13   :  { %p1201_p8 = por %p1200_p7, %p1199_p6 }
  0x15   :  { %p1202_p9 = pnand %p1201_p8, %p1195_p5 }
  0x17   :  { %1205 = shalt.err (!%p1202_p9)
}
  0x18   :  { %s1256_s28 = smov 192   ;;  %s1257_s29 = smov 12  }
  0x19   :  { %24 = dma.hbm_to_vmem [thread:$0]  %s1328_s0, 3072, %s19_s26, [#allocation3], %s1256_s28, %s1256_s28, %s1257_s29  }
  0x1a   :  { %s1258_s7 = smov [#allocation7]  }
  0x1b   :  { %s44_s8 = sshll.u32 %s1258_s7, 4  ;;  %s45_s8 = int_to_ptr.vmem [resolvable:$true] %s44_s8 }
  0x1c   :  { %s1214_s1 = scalar_lea.vmem %s45_s8, 1024  ;;  %p1219_p11 = scmp.lt.s32.totalorder %s45_s8, %s45_s8 }
  0x1d   :  { %p1215_p10 = scmp.ne.s32.totalorder %s45_s8, %s1214_s1  ;;  %p1220_p12 = scmp.lt.s32.totalorder %s1214_s1, %s1214_s1 }
  0x1f   :  { %p1221_p13 = por %p1220_p12, %p1219_p11 }
  0x21   :  { %p1222_p0 = pnand %p1221_p13, %p1215_p10 }
  0x23   :  { %1225 = shalt.err (!%p1222_p0)
}
  0x24   :  { %50 = dma.hbm_to_vmem [thread:$0]  %s1331_s3, 1024, %s45_s8, [#allocation6], %s1253_s21, %s1253_s21, %s1254_s22  }
  0x25   :  { %1246 = dma.done.wait [#allocation3], 3072  }
  0x26   :  { %1247 = vsyncadd [#allocation3], 4294964224 }
  0x27   :  { %1248 = dma.done.wait [#allocation6], 4096  }
  0x28   :  { %1249 = vsyncadd [#allocation6], 4294963200  ;;  %v1102_v0 = vld [vmem:[#allocation5 + $0x78] sm:$0xff]   ;;  %v1104_v2 = vld [vmem:[#allocation5 + $0x70] sm:$0xff]  }
  0x29   :  { %v1103_v1 = vld [vmem:[#allocation5 + $0x38] sm:$0xff]   ;;  %932 = vmatprep.subr.bf16.mxu0 %v1102_v0  ;;  %v1106_v4 = vld [vmem:[#allocation5 + $0x30] sm:$0xff]   ;;  %v1107_v5 = vld [vmem:[#allocation5 + $0x68] sm:$0xff]  }
  0x2a   :  { %933 = vmatpush3.bf16.msra.mxu0 %v1103_v1  ;;  %v1105_v3 = vld [vmem:[#allocation5 + $0xb8] sm:$0xff]   ;;  %v1108_v6 = vld [vmem:[#allocation5 + $0xb0] sm:$0xff]   ;;  %v1109_v7 = vld [vmem:[#allocation5 + $0x28] sm:$0xff]  }
  0x2b   :  { %934 = vmatprep.subr.bf16.mxu0 %v1104_v2  ;;  %1028 = vmatprep.subr.bf16.mxu1 %v1105_v3  ;;  %v1110_v8 = vld [vmem:[#allocation5 + $0x60] sm:$0xff]   ;;  %v1111_v9 = vld [vmem:[#allocation5 + $0xa8] sm:$0xff]   ;;  %v1113_v11 = vld [vmem:[#allocation5 + $0x58] sm:$0xff]  }
  0x2c   :  { %1029 = vmatpush3.bf16.msra.mxu1 %v1105_v3  ;;  %v1112_v10 = vld [vmem:[#allocation5 + $0x20] sm:$0xff]   ;;  %v1115_v13 = vld [vmem:[#allocation5 + $0x18] sm:$0xff]   ;;  %v1116_v15 = vld [vmem:[#allocation5 + $0x50] sm:$0xff]  }
  0x2d   :  { %1030 = vmatprep.subr.bf16.mxu1 %v1108_v6  ;;  %v1114_v12 = vld [vmem:[#allocation5 + $0xa0] sm:$0xff]   ;;  %v1117_v14 = vld [vmem:[#allocation5 + $0x98] sm:$0xff]   ;;  %v1118_v16 = vld [vmem:[#allocation5 + $0x10] sm:$0xff]  }
  0x2e   :  { %935 = vmatpush3.bf16.msra.mxu0 %v1106_v4  ;;  %v1120_v17 = vld [vmem:[#allocation5 + $0x90] sm:$0xff]   ;;  %v1119_v18 = vld [vmem:[#allocation5 + $0x48] sm:$0xff]   ;;  %v1122_v20 = vld [vmem:[#allocation5 + $0x40] sm:$0xff]  }
  0x2f   :  { %936 = vmatprep.subr.bf16.mxu0 %v1107_v5  ;;  %v1121_v19 = vld [vmem:[#allocation5 + $0x8] sm:$0xff]   ;;  %v1127_v22 = vld [vmem:[#allocation2 + $0x4] ss:$12 sps:$4 sm:$0xff]   ;;  %v1134_v31 = vld [vmem:[#allocation2 + $0x34] ss:$12 sps:$4 sm:$0xff]  }
  0x30   :  { %1031 = vmatpush3.bf16.msra.mxu1 %v1108_v6  ;;  %v1123_v21 = vld [vmem:[#allocation5 + $0x88] sm:$0xff]   ;;  %v1124_v23 = vld [vmem:[#allocation5] sm:$0xff]   ;;  %454 = vmatprep.mubr.bf16.mxu0 %v1127_v22  ;;  %v1138_v32 = vld [vmem:[#allocation2 + $0x50] ss:$12 sps:$4 sm:$0xff]  }
  0x31   :  { %1032 = vmatprep.subr.bf16.mxu1 %v1111_v9  ;;  %v1129_v24 = vld [vmem:[#allocation2 + $0x8] ss:$12 sps:$4 sm:$0xff]   ;;  %v1128_v25 = vld [vmem:[#allocation5 + $0x80] sm:$0xff]   ;;  %v1158_v34 = vld [vmem:[#allocation7 + $0x38] sm:$0xff]  }
  0x32   :  { %937 = vmatpush3.bf16.msra.mxu0 %v1109_v7  ;;  %1044 = vmatprep.mubr.bf16.mxu1 %v1129_v24  ;;  %v1125_v26 = vld [vmem:[#allocation2] ss:$12 sps:$4 sm:$0xff]   ;;  %v1131_v27 = vld [vmem:[#allocation2 + $0x1c] ss:$12 sps:$4 sm:$0xff]   ;;  %v1137_v29 = vld [vmem:[#allocation2 + $0x38] ss:$12 sps:$4 sm:$0xff]  }
  0x33   :  { %938 = vmatprep.subr.bf16.mxu0 %v1110_v8  ;;  %v1130_v28 = vld [vmem:[#allocation2 + $0x20] ss:$12 sps:$4 sm:$0xff]   ;;  %v1133_v30 = vld [vmem:[#allocation2 + $0x18] ss:$12 sps:$4 sm:$0xff]   ;;  %v1145_v33 = vld [vmem:[#allocation2 + $0x68] ss:$12 sps:$4 sm:$0xff]  }
  0x34   :  { %1033 = vmatpush3.bf16.msra.mxu1 %v1111_v9  ;;  %v1136_v35 = vld [vmem:[#allocation2 + $0x30] ss:$12 sps:$4 sm:$0xff]   ;;  %v1139_v37 = vld [vmem:[#allocation2 + $0x4c] ss:$12 sps:$4 sm:$0xff]   ;;  %v1141_v40 = vld [vmem:[#allocation2 + $0x48] ss:$12 sps:$4 sm:$0xff]  }
  0x35   :  { %1034 = vmatprep.subr.bf16.mxu1 %v1114_v12  ;;  %v1159_v36 = vld [vmem:[#allocation7 + $0x30] sm:$0xff]   ;;  %v1146_v38 = vld [vmem:[#allocation2 + $0x80] ss:$12 sps:$4 sm:$0xff]   ;;  %v1153_v39 = vld [vmem:[#allocation2 + $0x98] ss:$12 sps:$4 sm:$0xff]  }
  0x36   :  { %939 = vmatpush3.bf16.msra.mxu0 %v1112_v10  ;;  %v1142_v41 = vld [vmem:[#allocation2 + $0x64] ss:$12 sps:$4 sm:$0xff]   ;;  %v1144_v43 = vld [vmem:[#allocation2 + $0x60] ss:$12 sps:$4 sm:$0xff]   ;;  %v1147_v44 = vld [vmem:[#allocation2 + $0x7c] ss:$12 sps:$4 sm:$0xff]  }
  0x37   :  { %940 = vmatprep.subr.bf16.mxu0 %v1113_v11  ;;  %v1154_v42 = vld [vmem:[#allocation2 + $0xb0] ss:$12 sps:$4 sm:$0xff]   ;;  %v1149_v45 = vld [vmem:[#allocation2 + $0x78] ss:$12 sps:$4 sm:$0xff]   ;;  %v1150_v46 = vld [vmem:[#allocation2 + $0x94] ss:$12 sps:$4 sm:$0xff]  }
  0x38   :  { %1035 = vmatpush3.bf16.msra.mxu1 %v1114_v12  ;;  %v1152_v47 = vld [vmem:[#allocation2 + $0x90] ss:$12 sps:$4 sm:$0xff]   ;;  %v1155_v48 = vld [vmem:[#allocation2 + $0xac] ss:$12 sps:$4 sm:$0xff]   ;;  %v1157_v49 = vld [vmem:[#allocation2 + $0xa8] ss:$12 sps:$4 sm:$0xff]  }
  0x39   :  { %1036 = vmatprep.subr.bf16.mxu1 %v1117_v14  ;;  %v1160_v50 = vld [vmem:[#allocation7 + $0x28] sm:$0xff]   ;;  %v1161_v51 = vld [vmem:[#allocation7 + $0x20] sm:$0xff]   ;;  %v1162_v52 = vld [vmem:[#allocation7 + $0x18] sm:$0xff]  }
  0x3a   :  { %941 = vmatpush3.bf16.msra.mxu0 %v1115_v13  ;;  %v1163_v53 = vld [vmem:[#allocation7 + $0x10] sm:$0xff]   ;;  %v1164_v54 = vld [vmem:[#allocation7 + $0x8] sm:$0xff]   ;;  %v1165_v55 = vld [vmem:[#allocation7] sm:$0xff]  }
  0x3b   :  { %942 = vmatprep.subr.bf16.mxu0 %v1116_v15  ;;  %v1304_v58 = vld [vmem:[%s1330_s2] ss:$0 sm:$0xff] }
  0x3c   :  { %1037 = vmatpush3.bf16.msra.mxu1 %v1117_v14 }
  0x3d   :  { %1038 = vmatprep.subr.bf16.mxu1 %v1120_v17 }
  0x3e   :  { %943 = vmatpush3.bf16.msra.mxu0 %v1118_v16 }
  0x3f   :  { %944 = vmatprep.subr.bf16.mxu0 %v1119_v18 }
  0x40   :  { %1039 = vmatpush3.bf16.msra.mxu1 %v1120_v17 }
  0x41   :  { %1040 = vmatprep.subr.bf16.mxu1 %v1123_v21 }
  0x42   :  { %945 = vmatpush3.bf16.msra.mxu0 %v1121_v19 }
  0x43   :  { %946 = vmatprep.subr.bf16.mxu0 %v1122_v20 }
  0x44   :  { %1041 = vmatpush3.bf16.msra.mxu1 %v1123_v21 }
  0x45   :  { %1042 = vmatprep.subr.bf16.mxu1 %v1128_v25 }
  0x46   :  { %947 = vmatpush3.bf16.msra.mxu0 %v1124_v23 }
  0x48   :  { %1043 = vmatpush3.bf16.msra.mxu1 %v1128_v25 }
  0x49   :  { %455 = vmatmul.mubr.bf16.vlgmr.msra.gmra.mxu0 %v1125_v26  ;;  %1060 = vmatprep.subr.bf16.mxu1 %v1158_v34 }
  0x4a   :  { %462 = vmatprep.mubr.bf16.mxu0 %v1131_v27 }
  0x4b   :  { %1045 = vmatmul.mubr.bf16.vlgmr.msra.gmra.mxu1 %v1130_v28 }
  0x4c   :  { %1048 = vmatprep.mubr.bf16.mxu1 %v1137_v29  ;;  %1061 = vmatpush3.bf16.msra.mxu1 %v1158_v34 }
  0x4d   :  { %1062 = vmatprep.subr.bf16.mxu1 %v1159_v36 }
  0x50   :  { %1063 = vmatpush3.bf16.msra.mxu1 %v1159_v36 }
  0x51   :  { %463 = vmatmul.mubr.bf16.gmra.mxu0 %v1133_v30  ;;  %1064 = vmatprep.subr.bf16.mxu1 %v1160_v50 }
  0x52   :  { %470 = vmatprep.mubr.bf16.mxu0 %v1134_v31 }
  0x53   :  { %1049 = vmatmul.mubr.bf16.gmra.mxu1 %v1138_v32 }
  0x54   :  { %1052 = vmatprep.mubr.bf16.mxu1 %v1145_v33  ;;  %1065 = vmatpush3.bf16.msra.mxu1 %v1160_v50 }
  0x55   :  { %1066 = vmatprep.subr.bf16.mxu1 %v1161_v51 }
  0x58   :  { %1067 = vmatpush3.bf16.msra.mxu1 %v1161_v51 }
  0x59   :  { %471 = vmatmul.mubr.bf16.gmra.mxu0 %v1136_v35  ;;  %1068 = vmatprep.subr.bf16.mxu1 %v1162_v52 }
  0x5a   :  { %478 = vmatprep.mubr.bf16.mxu0 %v1139_v37 }
  0x5b   :  { %1053 = vmatmul.mubr.bf16.gmra.mxu1 %v1146_v38 }
  0x5c   :  { %1056 = vmatprep.mubr.bf16.mxu1 %v1153_v39  ;;  %1069 = vmatpush3.bf16.msra.mxu1 %v1162_v52 }
  0x5d   :  { %1070 = vmatprep.subr.bf16.mxu1 %v1163_v53 }
  0x60   :  { %1071 = vmatpush3.bf16.msra.mxu1 %v1163_v53 }
  0x61   :  { %479 = vmatmul.mubr.bf16.gmra.mxu0 %v1141_v40  ;;  %1072 = vmatprep.subr.bf16.mxu1 %v1164_v54 }
  0x62   :  { %486 = vmatprep.mubr.bf16.mxu0 %v1142_v41 }
  0x63   :  { %1057 = vmatmul.mubr.bf16.gmra.mxu1 %v1154_v42 }
  0x64   :  { %1073 = vmatpush3.bf16.msra.mxu1 %v1164_v54 }
  0x65   :  { %1074 = vmatprep.subr.bf16.mxu1 %v1165_v55 }
  0x68   :  { %1075 = vmatpush3.bf16.msra.mxu1 %v1165_v55 }
  0x69   :  { %487 = vmatmul.mubr.bf16.gmra.mxu0 %v1144_v43 }
  0x6a   :  { %494 = vmatprep.mubr.bf16.mxu0 %v1147_v44 }
  0x71   :  { %495 = vmatmul.mubr.bf16.gmra.mxu0 %v1149_v45 }
  0x72   :  { %502 = vmatprep.mubr.bf16.mxu0 %v1150_v46 }
  0x79   :  { %503 = vmatmul.mubr.bf16.gmra.mxu0 %v1152_v47 }
  0x7a   :  { %510 = vmatprep.mubr.bf16.mxu0 %v1155_v48 }
  0x81   :  { %511 = vmatmul.mubr.bf16.gmra.mxu0 %v1157_v49 }
 0x109   :  { %v948_v56 = vpop.f32.mrf.mxu0 }
 0x10b   :  { %v949_v57 = vpop.f32.mrf.mxu0  ;;  %v1046_v60 = vpop.f32.mrf.mxu1 }
 0x10c   :  { %v950_v59 = vadd.f32 %v949_v57, %v948_v56 }
 0x10d   :  { %v951_v61 = vpop.f32.mrf.mxu0  ;;  %v553_v63 = vpop.f32.mrf.mxu1 }
 0x10e   :  { %v457_v62 = vadd.f32 %v950_v59, %v1304_v58 }
 0x10f   :  { %v952_v0 = vpop.f32.mrf.mxu0  ;;  %v1047_v3 = vpop.f32.mrf.mxu1 }
 0x110   :  { %v953_v1 = vadd.f32 %v952_v0, %v951_v61  ;;  %v554_v2 = vadd.f32 %v553_v63, %v457_v62 }
 0x111   :  { %v954_v4 = vpop.f32.mrf.mxu0  ;;  %v556_v6 = vpop.f32.mrf.mxu1 }
 0x112   :  { %v460_v5 = vadd.f32 %v953_v1, %v1304_v58  ;;  %v632_v8 = vmul.f32 0.01, %v554_v2  ;;  %vm616_vm0 = vcmp.gt.f32.partialorder %v554_v2, 0.0 }
 0x113   :  { %v955_v7 = vpop.f32.mrf.mxu0  ;;  %v1050_v12 = vpop.f32.mrf.mxu1 }
 0x114   :  { %v956_v9 = vadd.f32 %v955_v7, %v954_v4  ;;  %v557_v10 = vadd.f32 %v556_v6, %v460_v5  ;;  %v648_v18 = vsel %vm616_vm0, %v554_v2, %v632_v8 }
 0x115   :  { %v957_v11 = vpop.f32.mrf.mxu0  ;;  %v569_v22 = vpop.f32.mrf.mxu1 }
 0x116   :  { %v465_v13 = vadd.f32 %v956_v9, %v1304_v58  ;;  %vm617_vm1 = vcmp.gt.f32.partialorder %v557_v10, 0.0  ;;  %v633_v14 = vmul.f32 0.01, %v557_v10 }
 0x117   :  { %v958_v15 = vpop.f32.mrf.mxu0  ;;  %v1051_v29 = vpop.f32.mrf.mxu1 }
 0x118   :  { %v562_v16 = vadd.f32 %v1046_v60, %v465_v13  ;;  %v959_v17 = vadd.f32 %v958_v15, %v957_v11  ;;  %v649_v19 = vsel %vm617_vm1, %v557_v10, %v633_v14 }
 0x119   :  { %v960_v20 = vpop.f32.mrf.mxu0  ;;  %v664_v21 = vpack.c.bf16 %v649_v19, %v648_v18  ;;  %v572_v39 = vpop.f32.mrf.mxu1 }
 0x11a   :  { %v468_v23 = vadd.f32 %v959_v17, %v1304_v58  ;;  %v634_v25 = vmul.f32 0.01, %v562_v16  ;;  %vm618_vm2 = vcmp.gt.f32.partialorder %v562_v16, 0.0 }
 0x11b   :  { %v961_v24 = vpop.f32.mrf.mxu0  ;;  %1076 = vmatprep.mubr.bf16.mxu1 %v664_v21  ;;  %v1054_v46 = vpop.f32.mrf.mxu1 }
 0x11c   :  { %v565_v26 = vadd.f32 %v1047_v3, %v468_v23  ;;  %v962_v27 = vadd.f32 %v961_v24, %v960_v20  ;;  %v650_v33 = vsel %vm618_vm2, %v562_v16, %v634_v25 }
 0x11d   :  { %v963_v28 = vpop.f32.mrf.mxu0  ;;  %v585_v56 = vpop.f32.mrf.mxu1 }
 0x11e   :  { %vm619_vm3 = vcmp.gt.f32.partialorder %v565_v26, 0.0  ;;  %v635_v30 = vmul.f32 0.01, %v565_v26  ;;  %v473_v31 = vadd.f32 %v962_v27, %v1304_v58 }
 0x11f   :  { %v964_v32 = vpop.f32.mrf.mxu0  ;;  %v1055_v0 = vpop.f32.mrf.mxu1 }
 0x120   :  { %v651_v34 = vsel %vm619_vm3, %v565_v26, %v635_v30  ;;  %v965_v35 = vadd.f32 %v964_v32, %v963_v28  ;;  %v570_v36 = vadd.f32 %v569_v22, %v473_v31 }
 0x121   :  { %v665_v37 = vpack.c.bf16 %v651_v34, %v650_v33  ;;  %v966_v38 = vpop.f32.mrf.mxu0  ;;  %v588_v9 = vpop.f32.mrf.mxu1 }
 0x122   :  { %v476_v40 = vadd.f32 %v965_v35, %v1304_v58  ;;  %v636_v42 = vmul.f32 0.01, %v570_v36  ;;  %vm620_vm4 = vcmp.gt.f32.partialorder %v570_v36, 0.0 }
 0x123   :  { %v967_v41 = vpop.f32.mrf.mxu0  ;;  %1077 = vmatmul.mubr.bf16.vlgmr.msra.gmra.mxu1 %v665_v37  ;;  %v1058_v17 = vpop.f32.mrf.mxu1 }
 0x124   :  { %v968_v43 = vadd.f32 %v967_v41, %v966_v38  ;;  %v573_v44 = vadd.f32 %v572_v39, %v476_v40  ;;  %v652_v52 = vsel %vm620_vm4, %v570_v36, %v636_v42 }
 0x125   :  { %v969_v45 = vpop.f32.mrf.mxu0  ;;  %v601_v27 = vpop.f32.mrf.mxu1 }
 0x126   :  { %v481_v47 = vadd.f32 %v968_v43, %v1304_v58  ;;  %vm621_vm5 = vcmp.gt.f32.partialorder %v573_v44, 0.0  ;;  %v637_v48 = vmul.f32 0.01, %v573_v44 }
 0x127   :  { %v970_v49 = vpop.f32.mrf.mxu0  ;;  %v1059_v34 = vpop.f32.mrf.mxu1 }
 0x128   :  { %v578_v50 = vadd.f32 %v1050_v12, %v481_v47  ;;  %v971_v51 = vadd.f32 %v970_v49, %v969_v45  ;;  %v653_v53 = vsel %vm621_vm5, %v573_v44, %v637_v48 }
 0x129   :  { %v972_v54 = vpop.f32.mrf.mxu0  ;;  %v666_v55 = vpack.c.bf16 %v653_v53, %v652_v52  ;;  %v604_v43 = vpop.f32.mrf.mxu1 }
 0x12a   :  { %v484_v57 = vadd.f32 %v971_v51, %v1304_v58  ;;  %v638_v60 = vmul.f32 0.01, %v578_v50  ;;  %vm622_vm6 = vcmp.gt.f32.partialorder %v578_v50, 0.0 }
 0x12b   :  { %v973_v59 = vpop.f32.mrf.mxu0  ;;  %1080 = vmatprep.mubr.bf16.mxu1 %v666_v55 }
 0x12c   :  { %v581_v61 = vadd.f32 %v1051_v29, %v484_v57  ;;  %v974_v62 = vadd.f32 %v973_v59, %v972_v54  ;;  %v654_v6 = vsel %vm622_vm6, %v578_v50, %v638_v60 }
 0x12d   :  { %v975_v63 = vpop.f32.mrf.mxu0 }
 0x12e   :  { %v639_v1 = vmul.f32 0.01, %v581_v61  ;;  %v489_v2 = vadd.f32 %v974_v62, %v1304_v58  ;;  %vm623_vm7 = vcmp.gt.f32.partialorder %v581_v61, 0.0 }
 0x12f   :  { %v976_v3 = vpop.f32.mrf.mxu0 }
 0x130   :  { %v977_v4 = vadd.f32 %v976_v3, %v975_v63  ;;  %v586_v5 = vadd.f32 %v585_v56, %v489_v2  ;;  %v655_v7 = vsel %vm623_vm7, %v581_v61, %v639_v1  ;;  %v923_v3 = vld [vmem:[%s1332_s4] ss:$0 sm:$0xff]  ;;  %s1259_s4 = smov [#allocation8]  }
 0x131   :  { %v978_v8 = vpop.f32.mrf.mxu0  ;;  %v667_v10 = vpack.c.bf16 %v655_v7, %v654_v6  ;;  %s861_s12 = sshll.u32 %s1259_s4, 4  ;;  %s862_s12 = int_to_ptr.vmem [resolvable:$true] %s861_s12 }
 0x132   :  { %v492_v11 = vadd.f32 %v977_v4, %v1304_v58  ;;  %v640_v13 = vmul.f32 0.01, %v586_v5  ;;  %vm624_vm8 = vcmp.gt.f32.partialorder %v586_v5, 0.0  ;;  %s1226_s13 = scalar_lea.vmem %s862_s12, 2048  ;;  %p1231_p2 = scmp.lt.s32.totalorder %s862_s12, %s862_s12 }
 0x133   :  { %v979_v12 = vpop.f32.mrf.mxu0  ;;  %1081 = vmatmul.mubr.bf16.gmra.mxu1 %v667_v10  ;;  %p1227_p1 = scmp.ne.s32.totalorder %s862_s12, %s1226_s13  ;;  %p1232_p3 = scmp.lt.s32.totalorder %s1226_s13, %s1226_s13 }
 0x134   :  { %v980_v14 = vadd.f32 %v979_v12, %v978_v8  ;;  %v589_v15 = vadd.f32 %v588_v9, %v492_v11  ;;  %v656_v23 = vsel %vm624_vm8, %v586_v5, %v640_v13 }
 0x135   :  { %v981_v16 = vpop.f32.mrf.mxu0  ;;  %p1233_p4 = por %p1232_p3, %p1231_p2 }
 0x136   :  { %v497_v18 = vadd.f32 %v980_v14, %v1304_v58  ;;  %vm625_vm9 = vcmp.gt.f32.partialorder %v589_v15, 0.0  ;;  %v641_v19 = vmul.f32 0.01, %v589_v15 }
 0x137   :  { %v982_v20 = vpop.f32.mrf.mxu0  ;;  %p1234_p5 = pnand %p1233_p4, %p1227_p1 }
 0x138   :  { %v594_v21 = vadd.f32 %v1054_v46, %v497_v18  ;;  %v983_v22 = vadd.f32 %v982_v20, %v981_v16  ;;  %v657_v24 = vsel %vm625_vm9, %v589_v15, %v641_v19 }
 0x139   :  { %v984_v25 = vpop.f32.mrf.mxu0  ;;  %v668_v26 = vpack.c.bf16 %v657_v24, %v656_v23 }
 0x13a   :  { %v500_v28 = vadd.f32 %v983_v22, %v1304_v58  ;;  %v642_v30 = vmul.f32 0.01, %v594_v21  ;;  %vm626_vm10 = vcmp.gt.f32.partialorder %v594_v21, 0.0 }
 0x13b   :  { %v985_v29 = vpop.f32.mrf.mxu0  ;;  %1084 = vmatprep.mubr.bf16.mxu1 %v668_v26 }
 0x13c   :  { %v597_v31 = vadd.f32 %v1055_v0, %v500_v28  ;;  %v986_v32 = vadd.f32 %v985_v29, %v984_v25  ;;  %v658_v40 = vsel %vm626_vm10, %v594_v21, %v642_v30 }
 0x13d   :  { %v987_v33 = vpop.f32.mrf.mxu0 }
 0x13e   :  { %v643_v35 = vmul.f32 0.01, %v597_v31  ;;  %v505_v36 = vadd.f32 %v986_v32, %v1304_v58  ;;  %vm627_vm11 = vcmp.gt.f32.partialorder %v597_v31, 0.0 }
 0x13f   :  { %v988_v37 = vpop.f32.mrf.mxu0 }
 0x140   :  { %v989_v38 = vadd.f32 %v988_v37, %v987_v33  ;;  %v602_v39 = vadd.f32 %v601_v27, %v505_v36  ;;  %v659_v41 = vsel %vm627_vm11, %v597_v31, %v643_v35 }
 0x141   :  { %v990_v42 = vpop.f32.mrf.mxu0  ;;  %v669_v44 = vpack.c.bf16 %v659_v41, %v658_v40 }
 0x142   :  { %v508_v45 = vadd.f32 %v989_v38, %v1304_v58  ;;  %v644_v47 = vmul.f32 0.01, %v602_v39  ;;  %vm628_vm12 = vcmp.gt.f32.partialorder %v602_v39, 0.0 }
 0x143   :  { %v991_v46 = vpop.f32.mrf.mxu0  ;;  %1085 = vmatmul.mubr.bf16.gmra.mxu1 %v669_v44 }
 0x144   :  { %v992_v48 = vadd.f32 %v991_v46, %v990_v42  ;;  %v605_v49 = vadd.f32 %v604_v43, %v508_v45  ;;  %v660_v56 = vsel %vm628_vm12, %v602_v39, %v644_v47 }
 0x145   :  { %v993_v50 = vpop.f32.mrf.mxu0 }
 0x146   :  { %v513_v51 = vadd.f32 %v992_v48, %v1304_v58  ;;  %vm629_vm13 = vcmp.gt.f32.partialorder %v605_v49, 0.0  ;;  %v645_v52 = vmul.f32 0.01, %v605_v49 }
 0x147   :  { %v994_v53 = vpop.f32.mrf.mxu0 }
 0x148   :  { %v610_v54 = vadd.f32 %v1058_v17, %v513_v51  ;;  %v995_v55 = vadd.f32 %v994_v53, %v993_v50  ;;  %v661_v57 = vsel %vm629_vm13, %v605_v49, %v645_v52 }
 0x149   :  { %v670_v59 = vpack.c.bf16 %v661_v57, %v660_v56 }
 0x14a   :  { %v516_v60 = vadd.f32 %v995_v55, %v1304_v58  ;;  %v646_v61 = vmul.f32 0.01, %v610_v54  ;;  %vm630_vm14 = vcmp.gt.f32.partialorder %v610_v54, 0.0 }
 0x14b   :  { %1088 = vmatprep.mubr.bf16.mxu1 %v670_v59 }
 0x14c   :  { %v613_v62 = vadd.f32 %v1059_v34, %v516_v60  ;;  %v662_v0 = vsel %vm630_vm14, %v610_v54, %v646_v61 }
 0x14e   :  { %v647_v63 = vmul.f32 0.01, %v613_v62  ;;  %vm631_vm15 = vcmp.gt.f32.partialorder %v613_v62, 0.0 }
 0x150   :  { %v663_v1 = vsel %vm631_vm15, %v613_v62, %v647_v63 }
 0x151   :  { %v671_v2 = vpack.c.bf16 %v663_v1, %v662_v0 }
 0x153   :  { %1089 = vmatmul.mubr.bf16.gmra.mxu1 %v671_v2 }
 0x1e3   :  { %v1078_v4 = vpop.f32.mrf.mxu1 }
 0x1e4   :  { %v786_v5 = vadd.f32 %v1078_v4, %v923_v3 }
 0x1e5   :  { %v777_v6 = vpop.f32.mrf.mxu1 }
 0x1e6   :  { %842 = vst [vmem:[#allocation8 + $0x10] sm:$0xff] %v786_v5  ;;  %v778_v7 = vadd.f32 %v923_v3, %v777_v6 }
 0x1e7   :  { %v1079_v58 = vpop.f32.mrf.mxu1 }
 0x1e8   :  { %840 = vst [vmem:[#allocation8] sm:$0xff] %v778_v7  ;;  %v789_v8 = vadd.f32 %v1079_v58, %v923_v3 }
 0x1e9   :  { %v780_v9 = vpop.f32.mrf.mxu1 }
 0x1ea   :  { %843 = vst [vmem:[#allocation8 + $0x18] sm:$0xff] %v789_v8  ;;  %v781_v10 = vadd.f32 %v923_v3, %v780_v9 }
 0x1ec   :  { %841 = vst [vmem:[#allocation8 + $0x8] sm:$0xff] %v781_v10 }
 0x1f3   :  { %v1082_v11 = vpop.f32.mrf.mxu1 }
 0x1f4   :  { %v802_v12 = vadd.f32 %v1082_v11, %v923_v3 }
 0x1f5   :  { %v793_v13 = vpop.f32.mrf.mxu1 }
 0x1f6   :  { %846 = vst [vmem:[#allocation8 + $0x30] sm:$0xff] %v802_v12  ;;  %v794_v14 = vadd.f32 %v923_v3, %v793_v13 }
 0x1f7   :  { %v1083_v15 = vpop.f32.mrf.mxu1 }
 0x1f8   :  { %844 = vst [vmem:[#allocation8 + $0x20] sm:$0xff] %v794_v14  ;;  %v805_v16 = vadd.f32 %v1083_v15, %v923_v3 }
 0x1f9   :  { %v796_v17 = vpop.f32.mrf.mxu1 }
 0x1fa   :  { %847 = vst [vmem:[#allocation8 + $0x38] sm:$0xff] %v805_v16  ;;  %v797_v18 = vadd.f32 %v923_v3, %v796_v17 }
 0x1fc   :  { %845 = vst [vmem:[#allocation8 + $0x28] sm:$0xff] %v797_v18 }
 0x203   :  { %v1086_v19 = vpop.f32.mrf.mxu1 }
 0x204   :  { %v818_v20 = vadd.f32 %v1086_v19, %v923_v3 }
 0x205   :  { %v809_v21 = vpop.f32.mrf.mxu1 }
 0x206   :  { %850 = vst [vmem:[#allocation8 + $0x50] sm:$0xff] %v818_v20  ;;  %v810_v22 = vadd.f32 %v923_v3, %v809_v21 }
 0x207   :  { %v1087_v23 = vpop.f32.mrf.mxu1 }
 0x208   :  { %848 = vst [vmem:[#allocation8 + $0x40] sm:$0xff] %v810_v22  ;;  %v821_v24 = vadd.f32 %v1087_v23, %v923_v3 }
 0x209   :  { %v812_v25 = vpop.f32.mrf.mxu1 }
 0x20a   :  { %851 = vst [vmem:[#allocation8 + $0x58] sm:$0xff] %v821_v24  ;;  %v813_v26 = vadd.f32 %v923_v3, %v812_v25 }
 0x20c   :  { %849 = vst [vmem:[#allocation8 + $0x48] sm:$0xff] %v813_v26 }
 0x213   :  { %v1090_v27 = vpop.f32.mrf.mxu1 }
 0x214   :  { %v834_v28 = vadd.f32 %v1090_v27, %v923_v3 }
 0x215   :  { %v825_v29 = vpop.f32.mrf.mxu1 }
 0x216   :  { %854 = vst [vmem:[#allocation8 + $0x70] sm:$0xff] %v834_v28  ;;  %v826_v30 = vadd.f32 %v923_v3, %v825_v29 }
 0x217   :  { %v1091_v31 = vpop.f32.mrf.mxu1 }
 0x218   :  { %852 = vst [vmem:[#allocation8 + $0x60] sm:$0xff] %v826_v30  ;;  %v837_v32 = vadd.f32 %v1091_v31, %v923_v3 }
 0x219   :  { %v828_v33 = vpop.f32.mrf.mxu1 }
 0x21a   :  { %855 = vst [vmem:[#allocation8 + $0x78] sm:$0xff] %v837_v32  ;;  %v829_v34 = vadd.f32 %v923_v3, %v828_v33 }
 0x21c   :  { %853 = vst [vmem:[#allocation8 + $0x68] sm:$0xff] %v829_v34 }
 0x21d   :  { %1237 = shalt.err (!%p1234_p5)
}
 0x21e   :  { %s1260_s14 = smov 128   ;;  %s1261_s15 = smov 8  }
 0x21f   :  { %867 = dma.vmem_to_hbm [thread:$0]  %s862_s12, 2048, %s1333_s5, [#allocation4], %s1260_s14, %s1260_s14, %s1261_s15  }
 0x220   :  { %1250 = dma.done.wait [#allocation4], 2048  }
 0x221   :  { %1251 = vsyncadd [#allocation4], 4294965248 }
 0x222   :  { %871 = vsyncpa [#allocation3], 1 }
 0x223   :  { %872 = vsyncpa [#allocation6], 1 }
 0x224   :  { %873 = vsyncpa [#allocation4], 1 }

</bundles_post_ra>
